<compile_context>
chip_gen: v6e
topology: v6e:2x2x1
jax: 0.10.0
libtpu: 0.0.40
codegen_flags: <defaults>
</compile_context>

<pallas_src>
import functools

import jax
import jax.numpy as jnp
from jax.experimental import pallas as pl
from jax.experimental.pallas import tpu as pltpu


def _upsample_kernel(x_ref, b_ref, o_ref, *, compute_dtype, precision):
    # x_ref: (TMS, G*W) super-row tile; b_ref: (G*W, G*s*s*W) constant 0/1 matrix;
    # o_ref: (TMS, G*s*s*W) lane-dense upsampled tile.
    x = x_ref[...].astype(compute_dtype)
    y = jnp.dot(x, b_ref[...], precision=precision,
                preferred_element_type=jnp.float32)
    o_ref[...] = y.astype(o_ref.dtype)


def _fold_replication_matrix(w, s, g, dtype):
    # B[i, q] = 1 iff input element i of a super-row feeds output element q:
    #   q = t*(s*s*w) + k*(s*w) + c   (t: row in group, k: H replica, c: output col)
    #   i = t*w + c // s
    gw = g * w
    gq = gw * s * s
    q = jnp.arange(gq, dtype=jnp.int32)
    src = (q // (s * s * w)) * w + (q % (s * w)) // s
    i = jnp.arange(gw, dtype=jnp.int32)
    return (i[:, None] == src[None, :]).astype(dtype)


def _pick_fold(rows, w, s):
    # Fold G consecutive rows into the lane axis so the output row width G*s*s*W
    # reaches >= 128 lanes (dense stores) while keeping the contraction length G*W
    # small. G must divide rows (= N*C*H).
    lane = w * s * s
    if lane >= 128 or rows <= 1:
        return 1
    g_target = -(-128 // lane)                       # ceil(128 / (W*s*s))
    for g in range(g_target, min(rows, 8 * g_target) + 1):
        if rows % g == 0:
            return g
    for g in range(min(g_target, rows), 0, -1):      # fallback: <128 lanes but correct
        if rows % g == 0:
            return g
    return 1


def _pick_row_tile(n_super_rows, out_row_bytes, target_bytes=1 << 20):
    # ~1 MiB output tile: large write DMAs, yet (in + out) double-buffered plus the
    # constant B stay far below the smallest default scoped VMEM (16 MiB on v5e).
    tms = max(8, target_bytes // max(1, out_row_bytes))
    tms = min(n_super_rows, tms, 2048)
    if n_super_rows >= 16:
        # At least two grid steps so the "parallel" grid keeps both v7x cores busy.
        tms = min(tms, -(-n_super_rows // 2))
    if tms >= 8:
        tms -= tms % 8
    return max(1, tms)


def upsample_nearest(x, scale_factor):
    """x: (N, C, H, W) -> (N, C, H*s, W*s), nearest-neighbor, integer s."""
    s = int(scale_factor)
    assert s == scale_factor and s >= 1, "only integer scale_factor supported"
    # TODO(synk): mode='bilinear' / fractional scale_factor not implemented.
    n, c, h, w = x.shape
    if s == 1:
        return x

    rows = n * c * h
    name = jnp.dtype(x.dtype).name
    if name == "bfloat16":
        compute_dtype = jnp.bfloat16
        precision = None                              # native bf16 MXU pass (exact here)
    elif name in ("float32", "float16", "int8", "uint8", "int16", "uint16"):
        compute_dtype = jnp.float32                   # exact embedding for all of these
        precision = jax.lax.Precision.HIGHEST         # keep full f32 mantissa through MXU
    else:
        # TODO(synk): int32/int64/float64/bool are not exactly representable through the
        # f32 MXU path; keep them on a plain-XLA nearest upsample.
        return jnp.repeat(jnp.repeat(x, s, axis=2), s, axis=3)

    g = _pick_fold(rows, w, s)
    gw = g * w                                        # folded input row width
    gq = gw * s * s                                   # folded (lane-dense) output row width
    b_bytes = gw * gq * jnp.dtype(compute_dtype).itemsize
    if b_bytes > (2 << 20):
        # TODO(synk): very large W needs a column-tiled (block-diagonal B) kernel;
        # fall back to plain XLA rather than blow the VMEM budget.
        return jnp.repeat(jnp.repeat(x, s, axis=2), s, axis=3)

    n_super = rows // g
    x2 = x.reshape(n_super, gw)                       # contiguous row-major view, free
    b_mat = _fold_replication_matrix(w, s, g, compute_dtype)

    itemsize = jnp.dtype(x.dtype).itemsize
    tms = _pick_row_tile(n_super, gq * itemsize)
    grid = (pl.cdiv(n_super, tms),)                   # masked tail block if tms !| n_super

    flops = 2 * n_super * gq * gw
    bytes_accessed = rows * w * itemsize * (1 + s * s) + b_bytes
    cost = pl.CostEstimate(flops=int(flops), transcendentals=0,
                           bytes_accessed=int(bytes_accessed))

    kernel = functools.partial(_upsample_kernel, compute_dtype=compute_dtype,
                               precision=precision)
    out2 = pl.pallas_call(
        kernel,
        out_shape=jax.ShapeDtypeStruct((n_super, gq), x.dtype),
        grid=grid,
        in_specs=[
            pl.BlockSpec((tms, gw), lambda i: (i, 0)),
            pl.BlockSpec((gw, gq), lambda i: (0, 0)),   # constant block: fetched once
        ],
        out_specs=pl.BlockSpec((tms, gq), lambda i: (i, 0)),
        compiler_params=pltpu.CompilerParams(dimension_semantics=("parallel",)),
        cost_estimate=cost,
    )(x2, b_mat)
    return out2.reshape(n, c, h * s, w * s)           # contiguous view, free


class Upsample:
    """Pallas equivalent of darknet's `Upsample` (nearest, integer scale)."""

    def __init__(self, scale_factor, mode="nearest"):
        assert mode == "nearest", "only mode='nearest' implemented"
        self.scale_factor = scale_factor

    def __call__(self, x):
        return upsample_nearest(x, self.scale_factor)


if __name__ == "__main__":
    key = jax.random.PRNGKey(0)
    x = jax.random.normal(key, (2, 4, 16, 16), dtype=jnp.float32)
    scale_factor = 2

    fn = jax.jit(upsample_nearest, static_argnums=1)
    y = jax.block_until_ready(fn(x, scale_factor))

    # Reference: nearest upsample == interleaved repeat along H and W.
    ref = jnp.repeat(jnp.repeat(x, scale_factor, axis=2), scale_factor, axis=3)

    assert y.shape == (2, 4, 32, 32), y.shape
    assert y.dtype == x.dtype
    assert bool(jnp.allclose(y, ref)), "mismatch vs nearest-interp reference"
    print("KERNEL_OK")
</pallas_src>

<mosaic_0001>
module attributes {stable_mosaic.version = 11 : i64} {
  func.func @_upsample_kernel(%arg0: i32, %arg1: memref<32x32xf32, #tpu.memory_space<vmem>>, %arg2: memref<32x128xf32, #tpu.memory_space<vmem>>, %arg3: memref<32x128xf32, #tpu.memory_space<vmem>>) attributes {dimension_semantics = [#tpu.dimension_semantics<parallel>], iteration_bounds = array<i64: 2>, scalar_prefetch = 0 : i64, scratch_operands = 0 : i64, tpu.core_type = #tpu.core_type<tc>, window_params = [{transform_indices = @transform_0, window_bounds = array<i64: 32, 32>}, {pipeline_mode = #tpu.pipeline_mode<synchronous>, transform_indices = @transform_1, window_bounds = array<i64: 32, 128>}, {transform_indices = @transform_2, window_bounds = array<i64: 32, 128>}]} {
    %c0 = arith.constant 0 : index
    %c0_0 = arith.constant 0 : index
    %0 = vector.load %arg1[%c0, %c0_0] : memref<32x32xf32, #tpu.memory_space<vmem>>, vector<32x32xf32>
    %c0_1 = arith.constant 0 : index
    %c0_2 = arith.constant 0 : index
    %1 = vector.load %arg2[%c0_1, %c0_2] : memref<32x128xf32, #tpu.memory_space<vmem>>, vector<32x128xf32>
    %cst = arith.constant dense<0.000000e+00> : vector<32x128xf32>
    %2 = tpu.matmul %0, %1, %cst {dimension_numbers = #tpu.dot_dimension_numbers<[1], [0], [0], [1], [0, 0, 1, 1], [], []>, precision = #tpu.contract_precision<fp32>} : vector<32x32xf32>, vector<32x128xf32>, vector<32x128xf32> -> vector<32x128xf32>
    %c0_3 = arith.constant 0 : index
    %c0_4 = arith.constant 0 : index
    %3 = vector.load %arg3[%c0_3, %c0_4] : memref<32x128xf32, #tpu.memory_space<vmem>>, vector<32x128xf32>
    tpu.vector_store %arg3[%c0_3, %c0_4], %2 {strides = array<i32>} : memref<32x128xf32, #tpu.memory_space<vmem>>, vector<32x128xf32>,
    return
  }
  func.func @transform_0(%arg0: i32) -> (i32, i32) {
    %c0_i32 = arith.constant 0 : i32
    %c0_i32_0 = arith.constant 0 : i32
    return %arg0, %c0_i32 : i32, i32
  }
  func.func @transform_1(%arg0: i32) -> (i32, i32) {
    %c0_i32 = arith.constant 0 : i32
    %c0_i32_0 = arith.constant 0 : i32
    %c0_i32_1 = arith.constant 0 : i32
    return %c0_i32, %c0_i32_0 : i32, i32
  }
  func.func @transform_2(%arg0: i32) -> (i32, i32) {
    %c0_i32 = arith.constant 0 : i32
    %c0_i32_0 = arith.constant 0 : i32
    return %arg0, %c0_i32 : i32, i32
  }
}

</mosaic_0001>

<bundles_post_ra>
// kernel: upsample_nearest.1
= control target key start
LH: loop header
LB: loop body
LE: loop exit
PB: predicated region body
PF: predicated region fallthrough
CT: control target
= control target key end

     0   :  { %s1016_s9 = smov 0   ;;  %s1160_s0 = inlined_call_operand.vmem [shape: f32[64,32], index: 0, kind: input, shape index: {}]   ;;  %s1161_s1 = inlined_call_operand.vmem [shape: f32[32,128], index: 1, kind: input, shape index: {}]   ;;  %s1162_s2 = inlined_call_operand.vmem [shape: f32[64,128], index: 2, kind: output, shape index: {}]  }
   0x1 LB: > { %s842_s10 = sadd.s32 4294967295, %s999_s9   ;;  %p846_p0 = scmp.ge.s32.totalorder %s999_s9, 1  ;;  %s999_s9 = sphi %s1016_s9, %s12_s9  }
   0x2   : > { %p113_p1 = scmp.lt.s32.totalorder %s999_s9, 3 }
   0x4   : > { %p114_p2 = pnand %p846_p0, %p113_p1 }
   0x5   : > { %s847_s17 = sshll.u32 (!%p114_p2), %s842_s10, 2 }
   0x6   : > { %117 = sbr.rel (%p114_p2) target bundleno = 256 (0x100), region = 28  ;;  %p136_p3 = scmp.lt.s32.totalorder (!%p114_p2), %s847_s17, 7 }
   0xb   : > { %v154_v0 = vld [vmem:[%s1161_s1 + $0x18] sm:$0xff]  ;;  %v153_v1 = vld [vmem:[%s1161_s1 + $0x10] sm:$0xff]  ;;  %v152_v2 = vld [vmem:[%s1161_s1 + $0x8] sm:$0xff]  ;;  %s1164_s17 = smov (!%p136_p3, %s847_s17), 7  ;;  %vm155_vm0 = vcmask 261120  }
   0xc   : > { %v1033_v3 = vand.u32 4294901760, %v154_v0  ;;  %v1035_v4 = vand.u32 4294901760, %v153_v1  ;;  %v1037_v5 = vand.u32 4294901760, %v152_v2  ;;  %v151_v6 = vld [vmem:[%s1161_s1] sm:$0xff]  ;;  %s848_s20 = sshll.u32 %s1164_s17, 3 }
   0xd   : > { %v1042_v7 = vand.u32 4294901760, %v151_v6  ;;  %s139_s23 = scalar_lea.vmem %s1160_s0, %s848_s20  ;;  %s145_s26 = scalar_lea.vmem %s1162_s2, %s848_s20 }
   0xe   : > { %901 = vmatprep.subr.mxu0 %v1033_v3  ;;  %v1046_v8 = vsub.f32 %v154_v0, %v1033_v3  ;;  %v1049_v9 = vsub.f32 %v153_v1, %v1035_v4  ;;  %v1052_v10 = vsub.f32 %v152_v2, %v1037_v5  ;;  %v147_v19 = vld [vmem:[%s139_s23] sm:$0xff]  ;;  %v148_v20 = vld [vmem:[%s139_s23 + $0x8] sm:$0xff]  ;;  %v149_v21 = vld [vmem:[%s139_s23 + $0x10] sm:$0xff] }
   0xf   : > { %902 = vmatpush3.msra.mxu0 %v1033_v3  ;;  %v1058_v11 = vsub.f32 %v151_v6, %v1042_v7  ;;  %v157_v22 = vsel %vm155_vm0, %v147_v19, 0  ;;  %v160_v23 = vsel %vm155_vm0, %v148_v20, 0  ;;  %v163_v24 = vsel %vm155_vm0, %v149_v21, 0  ;;  %v150_v25 = vld [vmem:[%s139_s23 + $0x18] sm:$0xff] }
  0x10   : > { %v1061_v12 = vand.u32 4294901760, %v1046_v8  ;;  %903 = vmatprep.subr.mxu0 %v1035_v4  ;;  %v1065_v13 = vand.u32 4294901760, %v1049_v9  ;;  %v1068_v14 = vand.u32 4294901760, %v1052_v10  ;;  %v1094_v29 = vand.u32 4294901760, %v157_v22 }
  0x11   : > { %904 = vmatpush3.msra.mxu0 %v1035_v4  ;;  %v1073_v15 = vand.u32 4294901760, %v1058_v11  ;;  %v1097_v30 = vand.u32 4294901760, %v160_v23  ;;  %v1099_v31 = vand.u32 4294901760, %v163_v24  ;;  %v166_v32 = vsel %vm155_vm0, %v150_v25, 0 }
  0x12   : > { %v305_v16 = vsub.f32 %v1046_v8, %v1061_v12  ;;  %v312_v17 = vsub.f32 %v1049_v9, %v1065_v13  ;;  %905 = vmatprep.subr.mxu0 %v1037_v5  ;;  %v319_v18 = vsub.f32 %v1052_v10, %v1068_v14  ;;  %v238_v34 = vsub.f32 %v157_v22, %v1094_v29 }
  0x13   : > { %906 = vmatpush3.msra.mxu0 %v1037_v5  ;;  %v326_v28 = vsub.f32 %v1058_v11, %v1073_v15  ;;  %923 = vmatprep.mubr.f32.mxu1 %v1094_v29  ;;  %v1104_v35 = vand.u32 4294901760, %v166_v32  ;;  %v248_v36 = vsub.f32 %v160_v23, %v1097_v30  ;;  %v258_v37 = vsub.f32 %v163_v24, %v1099_v31 }
  0x14   : > { %v306_v26 = vand.u32 4294901760, %v305_v16  ;;  %v313_v27 = vand.u32 4294901760, %v312_v17  ;;  %907 = vmatprep.subr.mxu0 %v1042_v7  ;;  %v320_v33 = vand.u32 4294901760, %v319_v18  ;;  %v239_v39 = vand.u32 4294901760, %v238_v34 }
  0x15   : > { %908 = vmatpush3.msra.mxu0 %v1042_v7  ;;  %v327_v38 = vand.u32 4294901760, %v326_v28  ;;  %v268_v40 = vsub.f32 %v166_v32, %v1104_v35  ;;  %v249_v41 = vand.u32 4294901760, %v248_v36  ;;  %v259_v42 = vand.u32 4294901760, %v258_v37 }
  0x16   : > { %915 = vmatprep.subr.mxu1 %v306_v26  ;;  %929 = vmatprep.subr.mxu0 %v1046_v8  ;;  %v240_v43 = vsub.f32 %v238_v34, %v239_v39 }
  0x17   : > { %916 = vmatpush3.msra.mxu1 %v306_v26  ;;  %v269_v44 = vand.u32 4294901760, %v268_v40  ;;  %v250_v45 = vsub.f32 %v248_v36, %v249_v41  ;;  %v260_v46 = vsub.f32 %v258_v37, %v259_v42 }
  0x18   : > { %917 = vmatprep.subr.mxu1 %v313_v27  ;;  %v241_v47 = vand.u32 4294901760, %v240_v43 }
  0x19   : > { %918 = vmatpush3.msra.mxu1 %v313_v27  ;;  %v270_v48 = vsub.f32 %v268_v40, %v269_v44  ;;  %v251_v49 = vand.u32 4294901760, %v250_v45  ;;  %v261_v50 = vand.u32 4294901760, %v260_v46 }
  0x1a   : > { %919 = vmatprep.subr.mxu1 %v320_v33  ;;  %909 = vmatprep.mubr.f32.mxu0 %v241_v47 }
  0x1b   : > { %920 = vmatpush3.msra.mxu1 %v320_v33  ;;  %910 = vmatmul.mubr.f32.vlgmr.msra.gmra.mxu0 %v251_v49  ;;  %v271_v51 = vand.u32 4294901760, %v270_v48 }
  0x1c   : > { %921 = vmatprep.subr.mxu1 %v327_v38  ;;  %930 = vmatpush3.msra.mxu0 %v1046_v8 }
  0x1d   : > { %922 = vmatpush3.msra.mxu1 %v327_v38  ;;  %931 = vmatprep.subr.mxu0 %v1049_v9 }
  0x1e   : > { %924 = vmatmul.mubr.f32.vlgmr.msra.gmra.mxu1 %v1097_v30  ;;  %943 = vmatprep.subr.mxu1 %v1033_v3 }
  0x1f   : > { %944 = vmatpush3.msra.mxu1 %v1033_v3  ;;  %932 = vmatpush3.msra.mxu0 %v1049_v9 }
  0x20   : > { %945 = vmatprep.subr.mxu1 %v1035_v4  ;;  %912 = vmatprep.mubr.f32.mxu0 %v261_v50 }
  0x21   : > { %926 = vmatprep.mubr.f32.mxu1 %v1099_v31  ;;  %933 = vmatprep.subr.mxu0 %v1052_v10 }
  0x22   : > { %946 = vmatpush3.msra.mxu1 %v1035_v4  ;;  %913 = vmatmul.mubr.f32.gmra.mxu0 %v271_v51 }
  0x23   : > { %927 = vmatmul.mubr.f32.gmra.mxu1 %v1104_v35  ;;  %934 = vmatpush3.msra.mxu0 %v1052_v10 }
  0x24   : > { %947 = vmatprep.subr.mxu1 %v1037_v5  ;;  %935 = vmatprep.subr.mxu0 %v1058_v11 }
  0x25   : > { %948 = vmatpush3.msra.mxu1 %v1037_v5  ;;  %936 = vmatpush3.msra.mxu0 %v1058_v11 }
  0x26   : > { %949 = vmatprep.subr.mxu1 %v1042_v7  ;;  %937 = vmatprep.mubr.f32.mxu0 %v238_v34 }
  0x27   : > { %950 = vmatpush3.msra.mxu1 %v1042_v7  ;;  %951 = vmatprep.mubr.f32.mxu1 %v239_v39 }
  0x28   : > { %957 = vmatprep.subr.mxu0 %v1061_v12  ;;  %938 = vmatmul.mubr.f32.vlgmr.msra.gmra.mxu0 %v248_v36 }
  0x29   : > { %952 = vmatmul.mubr.f32.vlgmr.msra.gmra.mxu1 %v249_v41  ;;  %958 = vmatpush3.msra.mxu0 %v1061_v12 }
  0x2a   : > { %971 = vmatprep.subr.mxu1 %v1033_v3  ;;  %959 = vmatprep.subr.mxu0 %v1065_v13 }
  0x2b   : > { %972 = vmatpush3.msra.mxu1 %v1033_v3  ;;  %960 = vmatpush3.msra.mxu0 %v1065_v13 }
  0x2c   : > { %973 = vmatprep.subr.mxu1 %v1035_v4  ;;  %940 = vmatprep.mubr.f32.mxu0 %v258_v37 }
  0x2d   : > { %954 = vmatprep.mubr.f32.mxu1 %v259_v42  ;;  %961 = vmatprep.subr.mxu0 %v1068_v14 }
  0x2e   : > { %974 = vmatpush3.msra.mxu1 %v1035_v4  ;;  %941 = vmatmul.mubr.f32.gmra.mxu0 %v268_v40 }
  0x2f   : > { %955 = vmatmul.mubr.f32.gmra.mxu1 %v269_v44  ;;  %962 = vmatpush3.msra.mxu0 %v1068_v14 }
  0x30   : > { %975 = vmatprep.subr.mxu1 %v1037_v5  ;;  %963 = vmatprep.subr.mxu0 %v1073_v15 }
  0x31   : > { %976 = vmatpush3.msra.mxu1 %v1037_v5  ;;  %964 = vmatpush3.msra.mxu0 %v1073_v15 }
  0x32   : > { %977 = vmatprep.subr.mxu1 %v1042_v7  ;;  %965 = vmatprep.mubr.f32.mxu0 %v1094_v29 }
  0x33   : > { %978 = vmatpush3.msra.mxu1 %v1042_v7  ;;  %979 = vmatprep.mubr.f32.mxu1 %v1094_v29 }
  0x34   : > { %966 = vmatmul.mubr.f32.vlgmr.msra.gmra.mxu0 %v1097_v30  ;;  %980 = vmatmul.mubr.f32.vlgmr.msra.gmra.mxu1 %v1097_v30 }
  0x35   : > { %968 = vmatprep.mubr.f32.mxu0 %v1099_v31  ;;  %982 = vmatprep.mubr.f32.mxu1 %v1099_v31 }
  0x38   : > { %969 = vmatmul.mubr.f32.gmra.mxu0 %v1104_v35  ;;  %983 = vmatmul.mubr.f32.gmra.mxu1 %v1104_v35 }
  0xdb   : > { %v911_v53 = vpop.f32.mrf.mxu0 }
  0xdd   : > { %v243_v54 = vpop.f32.mrf.mxu0 }
  0xde   : > { %v925_v52 = vpop.f32.mrf.mxu1 }
  0xdf   : > { %v371_v0 = vadd.f32 %v925_v52, %v911_v53 }
  0xe0   : > { %v364_v55 = vpop.f32.mrf.mxu1 }
  0xe1   : > { %v365_v2 = vadd.f32 %v364_v55, %v243_v54 }
  0xe2   : > { %v914_v56 = vpop.f32.mrf.mxu0 }
  0xe3   : > { %v928_v57 = vpop.f32.mrf.mxu1 }
  0xe4   : > { %v263_v58 = vpop.f32.mrf.mxu0  ;;  %v383_v8 = vadd.f32 %v928_v57, %v914_v56 }
  0xe5   : > { %v376_v59 = vpop.f32.mrf.mxu1 }
  0xe6   : > { %v377_v9 = vadd.f32 %v376_v59, %v263_v58 }
  0xe8   : > { %v939_v60 = vpop.f32.mrf.mxu0 }
  0xe9   : > { %v953_v61 = vpop.f32.mrf.mxu1  ;;  %v470_v4 = vadd.f32 %v939_v60, %v371_v0 }
  0xea   : > { %v462_v62 = vpop.f32.mrf.mxu0 }
  0xeb   : > { %v560_v63 = vpop.f32.mrf.mxu1  ;;  %v463_v6 = vadd.f32 %v462_v62, %v365_v2  ;;  %v569_v10 = vadd.f32 %v953_v61, %v470_v4 }
  0xed   : > { %v561_v14 = vadd.f32 %v560_v63, %v463_v6 }
  0xee   : > { %v942_v1 = vpop.f32.mrf.mxu0 }
  0xef   : > { %v956_v3 = vpop.f32.mrf.mxu1  ;;  %v484_v11 = vadd.f32 %v942_v1, %v383_v8 }
  0xf0   : > { %v476_v5 = vpop.f32.mrf.mxu0 }
  0xf1   : > { %v576_v7 = vpop.f32.mrf.mxu1  ;;  %v477_v15 = vadd.f32 %v476_v5, %v377_v9  ;;  %v585_v20 = vadd.f32 %v956_v3, %v484_v11 }
  0xf3   : > { %v577_v23 = vadd.f32 %v576_v7, %v477_v15 }
  0xf4   : > { %v967_v12 = vpop.f32.mrf.mxu0  ;;  %v981_v13 = vpop.f32.mrf.mxu1 }
  0xf5   : > { %v674_v16 = vadd.f32 %v967_v12, %v569_v10 }
  0xf6   : > { %v667_v17 = vpop.f32.mrf.mxu0  ;;  %v760_v18 = vpop.f32.mrf.mxu1 }
  0xf7   : > { %v668_v19 = vadd.f32 %v667_v17, %v561_v14  ;;  %v767_v25 = vadd.f32 %v981_v13, %v674_v16 }
  0xf8   : > { %v970_v21 = vpop.f32.mrf.mxu0  ;;  %v984_v22 = vpop.f32.mrf.mxu1 }
  0xf9   : > { %v761_v24 = vadd.f32 %v760_v18, %v668_v19  ;;  %v686_v26 = vadd.f32 %v970_v21, %v585_v20  ;;  %783 = vst [vmem:[%s145_s26 + $0x8] sm:$0xff] %v767_v25 }
  0xfa   : > { %v679_v27 = vpop.f32.mrf.mxu0  ;;  %v772_v29 = vpop.f32.mrf.mxu1 }
  0xfb   : > { %782 = vst [vmem:[%s145_s26] sm:$0xff] %v761_v24  ;;  %v680_v28 = vadd.f32 %v679_v27, %v577_v23  ;;  %v779_v31 = vadd.f32 %v984_v22, %v686_v26 }
  0xfd   : > { %v773_v30 = vadd.f32 %v772_v29, %v680_v28  ;;  %785 = vst [vmem:[%s145_s26 + $0x18] sm:$0xff] %v779_v31 }
  0xff   : > { %784 = vst [vmem:[%s145_s26 + $0x10] sm:$0xff] %v773_v30 }
 0x100 PF: > { %s12_s9 = sadd.s32 1, %s999_s9  }
 0x101   : > { %p9_p4 = scmp.ge.s32.totalorder %s12_s9, 4  }
 0x103   :  { %11 = sbr.rel (!%p9_p4) target bundleno = 1 (0x1), region = 58 }

</bundles_post_ra>
